<compile_context>
chip_gen: v7x
topology: tpu7x:2x2x1
jax: 0.10.0
libtpu: 0.0.40
codegen_flags: <defaults>
</compile_context>

<pallas_src>
import jax
import jax.numpy as jnp
from jax.experimental import pallas as pl
from jax.experimental.pallas import tpu as pltpu


def mlp_encoder_kernel(x_ref, w1_ref, w2_ref, shift_ref, b2_ref, o_ref, h_acc):
    """x_ref: (TB, tk) f32, w1_ref: (tk, H) bf16 (BN scale folded),
    w2_ref: (H, Lp) bf16 (zero-padded lane-dense), shift_ref: (1, H) f32,
    b2_ref: (1, Lp) f32, o_ref: (TB, Lp) f32, h_acc: (TB, H) f32 scratch."""
    k = pl.program_id(1)

    @pl.when(k == 0)
    def _():
        h_acc[...] = jnp.zeros_like(h_acc)

    # ---- Linear(D -> H) partial product over this K slice (bf16 MXU, f32 acc) ----
    # x cast to bf16 in-kernel: rides a free VPU slot, avoids an extra HBM pass.
    h_acc[...] += jnp.dot(x_ref[...].astype(jnp.bfloat16), w1_ref[...],
                          preferred_element_type=jnp.float32)

    @pl.when(k == pl.num_programs(1) - 1)
    def _():
        # fused (b1 + BN shift), then ReLU (f32 VPU; v5e has no bf16 VPU).
        h = jnp.maximum(h_acc[...] + shift_ref[...], 0.0)
        # ---- Dropout(0.3): identity in eval mode ----
        # ---- Linear(H -> latent, lane-padded to Lp) in bf16, f32 accumulation ----
        z = jnp.dot(h.astype(jnp.bfloat16), w2_ref[...],
                    preferred_element_type=jnp.float32)
        # ---- Sigmoid (EUP) ----
        o_ref[...] = jax.nn.sigmoid(z + b2_ref[...])


def mlp_encoder(x, w1_t, b1, bn_gamma, bn_beta, bn_mean, bn_var, w2_t, b2,
                *, eps=1e-5, tb_cap=512, tk_cap=2048):
    """x: (B, C, H, W) float32. Returns (B, latent_dim) float32. Eval-mode forward."""
    B = x.shape[0]
    D = 1
    for s in x.shape[1:]:
        D *= s
    H = w1_t.shape[1]
    L = w2_t.shape[1]

    # Lane-dense padded latent width (no masked vst on the output).
    Lp = max(128, pl.cdiv(L, 128) * 128)

    x2d = x.reshape(B, D)  # nn.Flatten(); no copy, no wrapper-side cast / pad pass.

    # ---- Fold BatchNorm (eval, running stats) + bias into W1 / one shift vector ----
    inv_std = 1.0 / jnp.sqrt(bn_var + eps)
    scale = bn_gamma * inv_std                                        # (H,)
    w1_folded = (w1_t * scale[None, :]).astype(jnp.bfloat16)          # (D, H) bf16
    shift = (b1 * scale + (bn_beta - bn_gamma * bn_mean * inv_std))   # (H,)
    shift = shift.astype(jnp.float32).reshape(1, H)

    # Lane-dense padded second linear: bf16 weights, f32 bias.
    w2_pad = jnp.zeros((H, Lp), jnp.bfloat16).at[:, :L].set(w2_t.astype(jnp.bfloat16))
    b2_pad = jnp.zeros((1, Lp), jnp.float32).at[0, :L].set(b2.astype(jnp.float32))

    # ---- Batch tiling (parallel axis; ragged last tile via masked writes) ----
    TB = B if B <= tb_cap else tb_cap          # tb_cap is 256-aligned (v6e MXU)
    num_b = pl.cdiv(B, TB)

    # ---- D-reduction tiling (keeps W1 tiles VMEM-safe for arbitrary D) ----
    if D <= tk_cap:
        tk = D
    else:
        tk = 0
        for cand in range(tk_cap - tk_cap % 128, 0, -128):
            if D % cand == 0:                  # exact division: no garbage in the sum
                tk = cand
                break
        if tk == 0:
            tk = D  # TODO(synk): no 128-multiple divisor of D; falls back to 1 K step.
    num_k = D // tk

    grid = (num_b, num_k)

    # Tight VMEM bound: double-buffered operands + f32 h accumulator + headroom.
    vmem_bytes = int(
        2 * (TB * tk * 4 + tk * H * 2 + H * Lp * 2 + H * 4 + Lp * 4 + TB * Lp * 4)
        + TB * H * 4
        + (2 << 20))

    cost = pl.CostEstimate(
        flops=2 * B * D * H + 2 * B * H * Lp,
        transcendentals=B * Lp,
        bytes_accessed=(B * D * 4 + num_b * D * H * 2 + H * Lp * 2
                        + H * 4 + Lp * 4 + B * Lp * 4),
    )

    out = pl.pallas_call(
        mlp_encoder_kernel,
        out_shape=jax.ShapeDtypeStruct((B, Lp), jnp.float32),
        grid=grid,
        in_specs=[
            pl.BlockSpec((TB, tk), lambda i, k: (i, k)),   # x tile (f32, cast in kernel)
            pl.BlockSpec((tk, H), lambda i, k: (k, 0)),    # folded W1 K-slice (bf16)
            pl.BlockSpec((H, Lp), lambda i, k: (0, 0)),    # padded W2 (bf16, resident)
            pl.BlockSpec((1, H), lambda i, k: (0, 0)),     # fused b1 + BN shift (f32)
            pl.BlockSpec((1, Lp), lambda i, k: (0, 0)),    # padded b2 (f32)
        ],
        out_specs=pl.BlockSpec((TB, Lp), lambda i, k: (i, 0)),
        scratch_shapes=[pltpu.VMEM((TB, H), jnp.float32)],
        compiler_params=pltpu.CompilerParams(
            dimension_semantics=("parallel", "arbitrary"),
            vmem_limit_bytes=vmem_bytes,
        ),
        cost_estimate=cost,
    )(x2d, w1_folded, w2_pad, shift, b2_pad)

    return out[:, :L]


def reference(x, w1_t, b1, bn_gamma, bn_beta, bn_mean, bn_var, w2_t, b2,
              eps=1e-5):
    B = x.shape[0]
    x2d = x.reshape(B, -1)
    h = x2d @ w1_t + b1
    h = (h - bn_mean) / jnp.sqrt(bn_var + eps) * bn_gamma + bn_beta
    h = jnp.maximum(h, 0.0)
    z = h @ w2_t + b2
    return jax.nn.sigmoid(z)


if __name__ == "__main__":
    # Small, module-consistent shapes: img_size=16 -> D=256, hidden=512, latent=2
    B, C, IMG, HID, LAT = 8, 1, 16, 512, 2
    D = IMG * IMG

    key = jax.random.PRNGKey(0)
    ks = jax.random.split(key, 8)

    x = jax.random.normal(ks[0], (B, C, IMG, IMG), dtype=jnp.float32)

    # Deterministic parameter init (PyTorch-style uniform bounds).
    lim1 = 1.0 / jnp.sqrt(jnp.float32(D))
    w1_t = jax.random.uniform(ks[1], (D, HID), minval=-lim1, maxval=lim1,
                              dtype=jnp.float32)
    b1 = jax.random.uniform(ks[2], (HID,), minval=-lim1, maxval=lim1,
                            dtype=jnp.float32)

    bn_gamma = jax.random.uniform(ks[3], (HID,), minval=0.5, maxval=1.5,
                                  dtype=jnp.float32)
    bn_beta = jax.random.uniform(ks[4], (HID,), minval=-0.5, maxval=0.5,
                                 dtype=jnp.float32)
    bn_mean = jax.random.normal(ks[5], (HID,), dtype=jnp.float32) * 0.1
    bn_var = jax.random.uniform(ks[6], (HID,), minval=0.5, maxval=1.5,
                                dtype=jnp.float32)

    lim2 = 1.0 / jnp.sqrt(jnp.float32(HID))
    w2_t = jax.random.uniform(ks[7], (HID, LAT), minval=-lim2, maxval=lim2,
                              dtype=jnp.float32)
    b2 = jnp.zeros((LAT,), dtype=jnp.float32)

    ref = reference(x, w1_t, b1, bn_gamma, bn_beta, bn_mean, bn_var, w2_t, b2)

    # 1) Default path (single K step at this small D).
    out = mlp_encoder(x, w1_t, b1, bn_gamma, bn_beta, bn_mean, bn_var, w2_t, b2)
    out = jax.block_until_ready(out)
    assert out.shape == (B, LAT), out.shape
    # bf16 matmuls -> loosened tolerance vs. the pure-f32 reference.
    assert jnp.allclose(out, ref, atol=2e-2, rtol=2e-2), \
        float(jnp.max(jnp.abs(out - ref)))

    # 2) Force the K-split reduction path (tk_cap=128 -> 2 K steps over D=256).
    out2 = mlp_encoder(x, w1_t, b1, bn_gamma, bn_beta, bn_mean, bn_var, w2_t, b2,
                       tk_cap=128)
    out2 = jax.block_until_ready(out2)
    assert out2.shape == (B, LAT), out2.shape
    assert jnp.allclose(out2, ref, atol=2e-2, rtol=2e-2), \
        float(jnp.max(jnp.abs(out2 - ref)))

    print("KERNEL_OK")
</pallas_src>

<mosaic_0001>
module attributes {stable_mosaic.version = 11 : i64} {
  func.func @mlp_encoder_kernel(%arg0: i32, %arg1: i32, %arg2: memref<8x256xf32, #tpu.memory_space<vmem>>, %arg3: memref<256x512xbf16, #tpu.memory_space<vmem>>, %arg4: memref<512x128xbf16, #tpu.memory_space<vmem>>, %arg5: memref<1x512xf32, #tpu.memory_space<vmem>>, %arg6: memref<1x128xf32, #tpu.memory_space<vmem>>, %arg7: memref<8x128xf32, #tpu.memory_space<vmem>>, %arg8: memref<8x512xf32, #tpu.memory_space<vmem>>) attributes {dimension_semantics = [#tpu.dimension_semantics<parallel>, #tpu.dimension_semantics<arbitrary>], iteration_bounds = array<i64: 1, 1>, scalar_prefetch = 0 : i64, scratch_operands = 1 : i64, tpu.core_type = #tpu.core_type<tc>, window_params = [{transform_indices = @transform_0, window_bounds = array<i64: 8, 256>}, {transform_indices = @transform_1, window_bounds = array<i64: 256, 512>}, {pipeline_mode = #tpu.pipeline_mode<synchronous>, transform_indices = @transform_2, window_bounds = array<i64: 512, 128>}, {pipeline_mode = #tpu.pipeline_mode<synchronous>, transform_indices = @transform_3, window_bounds = array<i64: 1, 512>}, {pipeline_mode = #tpu.pipeline_mode<synchronous>, transform_indices = @transform_4, window_bounds = array<i64: 1, 128>}, {transform_indices = @transform_5, window_bounds = array<i64: 8, 128>}]} {
    %c0_i32 = arith.constant 0 : i32
    %0 = arith.cmpi eq, %arg1, %c0_i32 : i32
    %1 = arith.extui %0 : i1 to i32
    %c0_i32_0 = arith.constant 0 : i32
    %2 = arith.cmpi ne, %1, %c0_i32_0 : i32
    scf.if %2 {
      %cst_10 = arith.constant 0.000000e+00 : f32
      %13 = vector.broadcast %cst_10 : f32 to vector<8x512xf32>
      %c0_11 = arith.constant 0 : index
      %c0_12 = arith.constant 0 : index
      %14 = vector.load %arg8[%c0_11, %c0_12] : memref<8x512xf32, #tpu.memory_space<vmem>>, vector<8x512xf32>
      tpu.vector_store %arg8[%c0_11, %c0_12], %13 {strides = array<i32>} : memref<8x512xf32, #tpu.memory_space<vmem>>, vector<8x512xf32>,
    } else {
    }
    %c0 = arith.constant 0 : index
    %c0_1 = arith.constant 0 : index
    %3 = vector.load %arg8[%c0, %c0_1] : memref<8x512xf32, #tpu.memory_space<vmem>>, vector<8x512xf32>
    %c0_2 = arith.constant 0 : index
    %c0_3 = arith.constant 0 : index
    %4 = vector.load %arg2[%c0_2, %c0_3] : memref<8x256xf32, #tpu.memory_space<vmem>>, vector<8x256xf32>
    %5 = arith.truncf %4 : vector<8x256xf32> to vector<8x256xbf16>
    %c0_4 = arith.constant 0 : index
    %c0_5 = arith.constant 0 : index
    %6 = vector.load %arg3[%c0_4, %c0_5] : memref<256x512xbf16, #tpu.memory_space<vmem>>, vector<256x512xbf16>
    %cst = arith.constant dense<0.000000e+00> : vector<8x512xf32>
    %7 = tpu.matmul %5, %6, %cst {dimension_numbers = #tpu.dot_dimension_numbers<[1], [0], [0], [1], [0, 0, 1, 1], [], []>} : vector<8x256xbf16>, vector<256x512xbf16>, vector<8x512xf32> -> vector<8x512xf32>
    %8 = arith.addf %3, %7 : vector<8x512xf32>
    %c0_6 = arith.constant 0 : index
    %c0_7 = arith.constant 0 : index
    %9 = vector.load %arg8[%c0_6, %c0_7] : memref<8x512xf32, #tpu.memory_space<vmem>>, vector<8x512xf32>
    tpu.vector_store %arg8[%c0_6, %c0_7], %8 {strides = array<i32>} : memref<8x512xf32, #tpu.memory_space<vmem>>, vector<8x512xf32>,
    %c0_i32_8 = arith.constant 0 : i32
    %10 = arith.cmpi eq, %arg1, %c0_i32_8 : i32
    %11 = arith.extui %10 : i1 to i32
    %c0_i32_9 = arith.constant 0 : i32
    %12 = arith.cmpi ne, %11, %c0_i32_9 : i32
    scf.if %12 {
      %c0_10 = arith.constant 0 : index
      %c0_11 = arith.constant 0 : index
      %13 = vector.load %arg8[%c0_10, %c0_11] : memref<8x512xf32, #tpu.memory_space<vmem>>, vector<8x512xf32>
      %c0_12 = arith.constant 0 : index
      %c0_13 = arith.constant 0 : index
      %14 = vector.load %arg5[%c0_12, %c0_13] : memref<1x512xf32, #tpu.memory_space<vmem>>, vector<1x512xf32>
      %15 = vector.broadcast %14 : vector<1x512xf32> to vector<8x512xf32>
      %16 = arith.addf %13, %15 : vector<8x512xf32>
      %cst_14 = arith.constant 0.000000e+00 : f32
      %17 = vector.broadcast %cst_14 : f32 to vector<8x512xf32>
      %18 = arith.maximumf %16, %17 : vector<8x512xf32>
      %19 = arith.truncf %18 : vector<8x512xf32> to vector<8x512xbf16>
      %c0_15 = arith.constant 0 : index
      %c0_16 = arith.constant 0 : index
      %20 = vector.load %arg4[%c0_15, %c0_16] : memref<512x128xbf16, #tpu.memory_space<vmem>>, vector<512x128xbf16>
      %cst_17 = arith.constant dense<0.000000e+00> : vector<8x128xf32>
      %21 = tpu.matmul %19, %20, %cst_17 {dimension_numbers = #tpu.dot_dimension_numbers<[1], [0], [0], [1], [0, 0, 1, 1], [], []>} : vector<8x512xbf16>, vector<512x128xbf16>, vector<8x128xf32> -> vector<8x128xf32>
      %c0_18 = arith.constant 0 : index
      %c0_19 = arith.constant 0 : index
      %22 = vector.load %arg6[%c0_18, %c0_19] : memref<1x128xf32, #tpu.memory_space<vmem>>, vector<1x128xf32>
      %23 = vector.broadcast %22 : vector<1x128xf32> to vector<8x128xf32>
      %24 = arith.addf %21, %23 : vector<8x128xf32>
      %25 = arith.negf %24 : vector<8x128xf32>
      %26 = math.exp %25 : vector<8x128xf32>
      %cst_20 = arith.constant 1.000000e+00 : f32
      %27 = vector.broadcast %cst_20 : f32 to vector<8x128xf32>
      %28 = arith.addf %27, %26 : vector<8x128xf32>
      %29 = arith.divf %27, %28 : vector<8x128xf32>
      %c0_21 = arith.constant 0 : index
      %c0_22 = arith.constant 0 : index
      %30 = vector.load %arg7[%c0_21, %c0_22] : memref<8x128xf32, #tpu.memory_space<vmem>>, vector<8x128xf32>
      tpu.vector_store %arg7[%c0_21, %c0_22], %29 {strides = array<i32>} : memref<8x128xf32, #tpu.memory_space<vmem>>, vector<8x128xf32>,
    } else {
    }
    return
  }
  func.func @transform_0(%arg0: i32, %arg1: i32) -> (i32, i32) {
    %c0_i32 = arith.constant 0 : i32
    return %arg0, %arg1 : i32, i32
  }
  func.func @transform_1(%arg0: i32, %arg1: i32) -> (i32, i32) {
    %c0_i32 = arith.constant 0 : i32
    %c0_i32_0 = arith.constant 0 : i32
    return %arg1, %c0_i32 : i32, i32
  }
  func.func @transform_2(%arg0: i32, %arg1: i32) -> (i32, i32) {
    %c0_i32 = arith.constant 0 : i32
    %c0_i32_0 = arith.constant 0 : i32
    %c0_i32_1 = arith.constant 0 : i32
    return %c0_i32, %c0_i32_0 : i32, i32
  }
  func.func @transform_3(%arg0: i32, %arg1: i32) -> (i32, i32) {
    %c0_i32 = arith.constant 0 : i32
    %c0_i32_0 = arith.constant 0 : i32
    %c0_i32_1 = arith.constant 0 : i32
    return %c0_i32, %c0_i32_0 : i32, i32
  }
  func.func @transform_4(%arg0: i32, %arg1: i32) -> (i32, i32) {
    %c0_i32 = arith.constant 0 : i32
    %c0_i32_0 = arith.constant 0 : i32
    %c0_i32_1 = arith.constant 0 : i32
    return %c0_i32, %c0_i32_0 : i32, i32
  }
  func.func @transform_5(%arg0: i32, %arg1: i32) -> (i32, i32) {
    %c0_i32 = arith.constant 0 : i32
    %c0_i32_0 = arith.constant 0 : i32
    return %arg0, %c0_i32 : i32, i32
  }
}

</mosaic_0001>

<bundles_post_ra>
// kernel: tpu_custom_call.1
= control target key start
LH: loop header
LB: loop body
LE: loop exit
PB: predicated region body
PF: predicated region fallthrough
CT: control target
= control target key end

     0   :  { %10 = vsyncpa [#allocation4], 0  ;;  %s1426_s0 = inlined_call_operand.hbm [shape: f32[8,256], index: 0, kind: input, shape index: {}]   ;;  %s1427_s1 = inlined_call_operand.hbm [shape: bf16[256,512], index: 1, kind: input, shape index: {}]   ;;  %s1428_s2 = inlined_call_operand.hbm [shape: bf16[512,128], index: 2, kind: input, shape index: {}]   ;;  %s1429_s3 = inlined_call_operand.vmem [shape: f32[1,512], index: 3, kind: input, shape index: {}]   ;;  %s1430_s4 = inlined_call_operand.vmem [shape: f32[1,128], index: 4, kind: input, shape index: {}]   ;;  %s1431_s5 = inlined_call_operand.hbm [shape: f32[8,128], index: 5, kind: output, shape index: {}]  }
   0x1   :  { %11 = vsyncpa [#allocation7], 0 }
   0x2   :  { %12 = vsyncpa [#allocation5], 0  ;;  %s1334_s18 = smov [#allocation6]   ;;  %s1240_s22 = scalar_lea.hbm %s1427_s1, 8192 }
   0x3   :  { %s28_s19 = sshll.u32 %s1334_s18, 4  ;;  %p1241_p0 = scmp.ne.s32.totalorder %s1427_s1, %s1240_s22  ;;  %s29_s19 = int_to_ptr.vmem [resolvable:$true] %s28_s19 }
   0x4   :  { %p1244_p1 = scmp.lt.u32.totalorder %s1240_s22, %s1427_s1 }
   0x6   :  { %p1246_p2 = pnand %p1244_p1, %p1241_p0 }
   0x8   :  { %1249 = shalt.err (!%p1246_p2)
}
   0x9   :  { %s1250_s27 = scalar_lea.vmem %s29_s19, 8192  ;;  %p1255_p4 = scmp.lt.s32.totalorder %s29_s19, %s29_s19 }
   0xa   :  { %p1251_p3 = scmp.ne.s32.totalorder %s29_s19, %s1250_s27  ;;  %p1256_p5 = scmp.lt.s32.totalorder %s1250_s27, %s1250_s27 }
   0xc   :  { %p1257_p6 = por %p1256_p5, %p1255_p4 }
   0xe   :  { %p1258_p7 = pnand %p1257_p6, %p1251_p3 }
  0x10   :  { %1261 = shalt.err (!%p1258_p7)
}
  0x11   :  { %s1335_s28 = smov 256   ;;  %s1336_s29 = smov 16  }
  0x12   :  { %34 = dma.hbm_to_vmem [thread:$0]  %s1427_s1, 8192, %s29_s19, [#allocation7], %s1335_s28, %s1335_s28, %s1336_s29  }
  0x13   :  { %s1337_s7 = smov [#allocation3]   ;;  %s1338_s9 = smov [#allocation8]  }
  0x14   :  { %s19_s8 = sshll.u32 %s1337_s7, 4  ;;  %s40_s10 = sshll.u32 %s1338_s9, 4  ;;  %s20_s8 = int_to_ptr.vmem [resolvable:$true] %s19_s8  ;;  %s41_s10 = int_to_ptr.vmem [resolvable:$true] %s40_s10 }
  0x15   :  { %s1262_s13 = scalar_lea.hbm %s1426_s0, 256 }
  0x16   :  { %p1263_p8 = scmp.ne.s32.totalorder %s1426_s0, %s1262_s13  ;;  %p1266_p9 = scmp.lt.u32.totalorder %s1262_s13, %s1426_s0 }
  0x18   :  { %p1268_p10 = pnand %p1266_p9, %p1263_p8 }
  0x1a   :  { %1271 = shalt.err (!%p1268_p10)
}
  0x1b   :  { %s1272_s1 = scalar_lea.vmem %s20_s8, 256  ;;  %p1277_p12 = scmp.lt.s32.totalorder %s20_s8, %s20_s8 }
  0x1c   :  { %p1273_p11 = scmp.ne.s32.totalorder %s20_s8, %s1272_s1  ;;  %p1278_p13 = scmp.lt.s32.totalorder %s1272_s1, %s1272_s1 }
  0x1e   :  { %p1279_p0 = por %p1278_p13, %p1277_p12 }
  0x20   :  { %p1280_p1 = pnand %p1279_p0, %p1273_p11 }
  0x22   :  { %1283 = shalt.err (!%p1280_p1)
}
  0x23   :  { %22 = dma.hbm_to_vmem [thread:$0]  %s1426_s0, 256, %s20_s8, [#allocation4]  }
  0x24   :  { %s1284_s22 = scalar_lea.hbm %s1428_s2, 4096 }
  0x25   :  { %p1285_p2 = scmp.ne.s32.totalorder %s1428_s2, %s1284_s22  ;;  %p1288_p3 = scmp.lt.u32.totalorder %s1284_s22, %s1428_s2 }
  0x27   :  { %p1290_p4 = pnand %p1288_p3, %p1285_p2 }
  0x29   :  { %1293 = shalt.err (!%p1290_p4)
}
  0x2a   :  { %s1294_s27 = scalar_lea.vmem %s41_s10, 4096  ;;  %p1299_p6 = scmp.lt.s32.totalorder %s41_s10, %s41_s10 }
  0x2b   :  { %p1295_p5 = scmp.ne.s32.totalorder %s41_s10, %s1294_s27  ;;  %p1300_p7 = scmp.lt.s32.totalorder %s1294_s27, %s1294_s27 }
  0x2d   :  { %p1301_p8 = por %p1300_p7, %p1299_p6 }
  0x2f   :  { %p1302_p9 = pnand %p1301_p8, %p1295_p5 }
  0x31   :  { %1305 = shalt.err (!%p1302_p9)
}
  0x32   :  { %s1339_s0 = smov 64   ;;  %s1340_s28 = smov 4  }
  0x33   :  { %46 = dma.hbm_to_vmem [thread:$0]  %s1428_s2, 4096, %s41_s10, [#allocation7], %s1339_s0, %s1339_s0, %s1340_s28  }
  0x34   :  { %1328 = dma.done.wait [#allocation4], 256  }
  0x35   :  { %1329 = vsyncadd [#allocation4], 4294967040 }
  0x36   :  { %1330 = dma.done.wait [#allocation7], 12288  }
  0x37   :  { %1331 = vsyncadd [#allocation7], 4294955008  ;;  %v1108_v0 = vld [vmem:[#allocation6 + $0x4] ss:$16 sps:$4 sm:$0xff]   ;;  %v1110_v1 = vld [vmem:[#allocation6 + $0xc] ss:$16 sps:$4 sm:$0xff]  }
  0x38   :  { %461 = vmatprep.subr.bf16.mxu0 %v1108_v0  ;;  %v1112_v2 = vld [vmem:[#allocation6] ss:$16 sps:$4 sm:$0xff]   ;;  %v1113_v3 = vld [vmem:[#allocation6 + $0x8] ss:$16 sps:$4 sm:$0xff]   ;;  %502 = vmatprep.subr.bf16.mxu1 %v1110_v1  ;;  %v1114_v4 = vld [vmem:[#allocation6 + $0x24] ss:$16 sps:$4 sm:$0xff]  }
  0x39   :  { %462 = vmatpush1.bf16.msra.mxu0 %v1112_v2  ;;  %503 = vmatpush1.bf16.msra.mxu1 %v1113_v3  ;;  %v1116_v5 = vld [vmem:[#allocation6 + $0x2c] ss:$16 sps:$4 sm:$0xff]   ;;  %v1118_v6 = vld [vmem:[#allocation6 + $0x20] ss:$16 sps:$4 sm:$0xff]   ;;  %v1119_v7 = vld [vmem:[#allocation6 + $0x28] ss:$16 sps:$4 sm:$0xff]  }
  0x3a   :  { %463 = vmatprep.subr.bf16.mxu0 %v1114_v4  ;;  %504 = vmatprep.subr.bf16.mxu1 %v1116_v5  ;;  %v1120_v8 = vld [vmem:[#allocation6 + $0x44] ss:$16 sps:$4 sm:$0xff]   ;;  %v1122_v9 = vld [vmem:[#allocation6 + $0x4c] ss:$16 sps:$4 sm:$0xff]   ;;  %v1124_v10 = vld [vmem:[#allocation6 + $0x40] ss:$16 sps:$4 sm:$0xff]  }
  0x3b   :  { %v1125_v11 = vld [vmem:[#allocation6 + $0x48] ss:$16 sps:$4 sm:$0xff]   ;;  %v1126_v12 = vld [vmem:[#allocation6 + $0x64] ss:$16 sps:$4 sm:$0xff]   ;;  %v1128_v13 = vld [vmem:[#allocation6 + $0x6c] ss:$16 sps:$4 sm:$0xff]  }
  0x3c   :  { %v1130_v14 = vld [vmem:[#allocation6 + $0x60] ss:$16 sps:$4 sm:$0xff]   ;;  %v1131_v15 = vld [vmem:[#allocation6 + $0x68] ss:$16 sps:$4 sm:$0xff]   ;;  %v1132_v16 = vld [vmem:[#allocation6 + $0x84] ss:$16 sps:$4 sm:$0xff]  }
  0x3d   :  { %464 = vmatpush1.bf16.msra.mxu0 %v1118_v6  ;;  %505 = vmatpush1.bf16.msra.mxu1 %v1119_v7  ;;  %v1134_v17 = vld [vmem:[#allocation6 + $0x8c] ss:$16 sps:$4 sm:$0xff]   ;;  %v1136_v18 = vld [vmem:[#allocation6 + $0x80] ss:$16 sps:$4 sm:$0xff]   ;;  %v1137_v19 = vld [vmem:[#allocation6 + $0x88] ss:$16 sps:$4 sm:$0xff]  }
  0x3e   :  { %465 = vmatprep.subr.bf16.mxu0 %v1120_v8  ;;  %506 = vmatprep.subr.bf16.mxu1 %v1122_v9  ;;  %v1138_v20 = vld [vmem:[#allocation6 + $0xa4] ss:$16 sps:$4 sm:$0xff]   ;;  %v1140_v21 = vld [vmem:[#allocation6 + $0xac] ss:$16 sps:$4 sm:$0xff]   ;;  %v1142_v22 = vld [vmem:[#allocation6 + $0xa0] ss:$16 sps:$4 sm:$0xff]  }
  0x3f   :  { %v1143_v23 = vld [vmem:[#allocation6 + $0xa8] ss:$16 sps:$4 sm:$0xff]   ;;  %v1144_v24 = vld [vmem:[#allocation6 + $0xc4] ss:$16 sps:$4 sm:$0xff]   ;;  %v1146_v25 = vld [vmem:[#allocation6 + $0xcc] ss:$16 sps:$4 sm:$0xff]  }
  0x40   :  { %v1148_v26 = vld [vmem:[#allocation6 + $0xc0] ss:$16 sps:$4 sm:$0xff]   ;;  %v1149_v27 = vld [vmem:[#allocation6 + $0xc8] ss:$16 sps:$4 sm:$0xff]   ;;  %v1150_v28 = vld [vmem:[#allocation6 + $0xe4] ss:$16 sps:$4 sm:$0xff]  }
  0x41   :  { %466 = vmatpush1.bf16.msra.mxu0 %v1124_v10  ;;  %507 = vmatpush1.bf16.msra.mxu1 %v1125_v11  ;;  %v1152_v29 = vld [vmem:[#allocation6 + $0xec] ss:$16 sps:$4 sm:$0xff]   ;;  %v1154_v30 = vld [vmem:[#allocation6 + $0xe0] ss:$16 sps:$4 sm:$0xff]   ;;  %v1155_v31 = vld [vmem:[#allocation6 + $0xe8] ss:$16 sps:$4 sm:$0xff]  }
  0x42   :  { %467 = vmatprep.subr.bf16.mxu0 %v1126_v12  ;;  %508 = vmatprep.subr.bf16.mxu1 %v1128_v13  ;;  %v1156_v32 = vld [vmem:[#allocation6 + $0x104] ss:$16 sps:$4 sm:$0xff]   ;;  %v1158_v33 = vld [vmem:[#allocation6 + $0x10c] ss:$16 sps:$4 sm:$0xff]   ;;  %v1160_v34 = vld [vmem:[#allocation6 + $0x100] ss:$16 sps:$4 sm:$0xff]  }
  0x43   :  { %v1161_v35 = vld [vmem:[#allocation6 + $0x108] ss:$16 sps:$4 sm:$0xff]   ;;  %v1162_v36 = vld [vmem:[#allocation6 + $0x124] ss:$16 sps:$4 sm:$0xff]   ;;  %v1164_v37 = vld [vmem:[#allocation6 + $0x12c] ss:$16 sps:$4 sm:$0xff]  }
  0x44   :  { %v1166_v38 = vld [vmem:[#allocation6 + $0x120] ss:$16 sps:$4 sm:$0xff]   ;;  %v1167_v39 = vld [vmem:[#allocation6 + $0x128] ss:$16 sps:$4 sm:$0xff]   ;;  %v1168_v40 = vld [vmem:[#allocation6 + $0x144] ss:$16 sps:$4 sm:$0xff]  }
  0x45   :  { %468 = vmatpush1.bf16.msra.mxu0 %v1130_v14  ;;  %509 = vmatpush1.bf16.msra.mxu1 %v1131_v15  ;;  %v1170_v41 = vld [vmem:[#allocation6 + $0x14c] ss:$16 sps:$4 sm:$0xff]   ;;  %v1172_v42 = vld [vmem:[#allocation6 + $0x140] ss:$16 sps:$4 sm:$0xff]   ;;  %v1173_v43 = vld [vmem:[#allocation6 + $0x148] ss:$16 sps:$4 sm:$0xff]  }
  0x46   :  { %469 = vmatprep.subr.bf16.mxu0 %v1132_v16  ;;  %510 = vmatprep.subr.bf16.mxu1 %v1134_v17  ;;  %v1174_v44 = vld [vmem:[#allocation6 + $0x164] ss:$16 sps:$4 sm:$0xff]   ;;  %v1176_v45 = vld [vmem:[#allocation6 + $0x16c] ss:$16 sps:$4 sm:$0xff]   ;;  %v1178_v46 = vld [vmem:[#allocation6 + $0x160] ss:$16 sps:$4 sm:$0xff]  }
  0x47   :  { %v74_v47 = vld [vmem:[#allocation3 + $0x8] sm:$0xff]  ;;  %v1180_v50 = vld [vmem:[#allocation6 + $0x184] ss:$16 sps:$4 sm:$0xff]   ;;  %v1184_v52 = vld [vmem:[#allocation6 + $0x180] ss:$16 sps:$4 sm:$0xff]   ;;  %s1341_s8 = smov [#allocation9]  }
  0x48   :  { %v1179_v48 = vld [vmem:[#allocation6 + $0x168] ss:$16 sps:$4 sm:$0xff]   ;;  %v76_v49 = vpack.c.bf16 %v74_v47, %v74_v47  ;;  %v1182_v51 = vld [vmem:[#allocation6 + $0x18c] ss:$16 sps:$4 sm:$0xff]   ;;  %v1186_v54 = vld [vmem:[#allocation6 + $0x1a4] ss:$16 sps:$4 sm:$0xff]  }
  0x49   :  { %470 = vmatpush1.bf16.msra.mxu0 %v1136_v18  ;;  %511 = vmatpush1.bf16.msra.mxu1 %v1137_v19  ;;  %v1185_v53 = vld [vmem:[#allocation6 + $0x188] ss:$16 sps:$4 sm:$0xff]   ;;  %v1188_v55 = vld [vmem:[#allocation6 + $0x1ac] ss:$16 sps:$4 sm:$0xff]   ;;  %v1190_v56 = vld [vmem:[#allocation6 + $0x1a0] ss:$16 sps:$4 sm:$0xff]  }
  0x4a   :  { %471 = vmatprep.subr.bf16.mxu0 %v1138_v20  ;;  %512 = vmatprep.subr.bf16.mxu1 %v1140_v21  ;;  %v1191_v57 = vld [vmem:[#allocation6 + $0x1a8] ss:$16 sps:$4 sm:$0xff]   ;;  %v1192_v58 = vld [vmem:[#allocation6 + $0x1c4] ss:$16 sps:$4 sm:$0xff]   ;;  %v1194_v59 = vld [vmem:[#allocation6 + $0x1cc] ss:$16 sps:$4 sm:$0xff]  }
  0x4b   :  { %493 = vmatprep.mubr.bf16.mxu0 %v76_v49  ;;  %534 = vmatprep.mubr.bf16.mxu1 %v76_v49  ;;  %v1196_v60 = vld [vmem:[#allocation6 + $0x1c0] ss:$16 sps:$4 sm:$0xff]   ;;  %v1197_v61 = vld [vmem:[#allocation6 + $0x1c8] ss:$16 sps:$4 sm:$0xff]   ;;  %v1198_v62 = vld [vmem:[#allocation6 + $0x1e4] ss:$16 sps:$4 sm:$0xff]  }
  0x4c   :  { %v1200_v63 = vld [vmem:[#allocation6 + $0x1ec] ss:$16 sps:$4 sm:$0xff]   ;;  %v1202_v0 = vld [vmem:[#allocation6 + $0x1e0] ss:$16 sps:$4 sm:$0xff]   ;;  %v1203_v1 = vld [vmem:[#allocation6 + $0x1e8] ss:$16 sps:$4 sm:$0xff]  }
  0x4d   :  { %472 = vmatpush1.bf16.msra.mxu0 %v1142_v22  ;;  %513 = vmatpush1.bf16.msra.mxu1 %v1143_v23  ;;  %v73_v2 = vld [vmem:[#allocation3] sm:$0xff]  ;;  %v1204_v3 = vld [vmem:[#allocation8 + $0x40] sm:$0xff]   ;;  %v1208_v8 = vld [vmem:[#allocation8 + $0x48] sm:$0xff]   ;;  %s948_s9 = sshll.u32 %s1341_s8, 4  ;;  %s949_s9 = int_to_ptr.vmem [resolvable:$true] %s948_s9 }
  0x4e   :  { %473 = vmatprep.subr.bf16.mxu0 %v1144_v24  ;;  %514 = vmatprep.subr.bf16.mxu1 %v1146_v25  ;;  %v1205_v4 = vld [vmem:[#allocation8 + $0xc0] sm:$0xff]   ;;  %v75_v6 = vpack.c.bf16 %v73_v2, %v73_v2  ;;  %v1209_v9 = vld [vmem:[#allocation8 + $0xc8] sm:$0xff]   ;;  %v1212_v12 = vld [vmem:[#allocation8 + $0x50] sm:$0xff]   ;;  %p1311_p11 = scmp.lt.s32.totalorder %s949_s9, %s949_s9 }
  0x4f   :  { %v1206_v5 = vld [vmem:[#allocation8] sm:$0xff]   ;;  %v1210_v10 = vld [vmem:[#allocation8 + $0x8] sm:$0xff]   ;;  %v1213_v13 = vld [vmem:[#allocation8 + $0xd0] sm:$0xff]  }
  0x50   :  { %v1207_v7 = vld [vmem:[#allocation8 + $0x80] sm:$0xff]   ;;  %v1211_v11 = vld [vmem:[#allocation8 + $0x88] sm:$0xff]   ;;  %v1214_v14 = vld [vmem:[#allocation8 + $0x10] sm:$0xff]  }
  0x51   :  { %474 = vmatpush1.bf16.msra.mxu0 %v1148_v26  ;;  %515 = vmatpush1.bf16.msra.mxu1 %v1149_v27  ;;  %v1215_v15 = vld [vmem:[#allocation8 + $0x90] sm:$0xff]   ;;  %v1216_v16 = vld [vmem:[#allocation8 + $0x58] sm:$0xff]   ;;  %v1220_v20 = vld [vmem:[#allocation8 + $0x60] sm:$0xff]  }
  0x52   :  { %475 = vmatprep.subr.bf16.mxu0 %v1150_v28  ;;  %516 = vmatprep.subr.bf16.mxu1 %v1152_v29  ;;  %v1217_v17 = vld [vmem:[#allocation8 + $0xd8] sm:$0xff]   ;;  %v1221_v21 = vld [vmem:[#allocation8 + $0xe0] sm:$0xff]   ;;  %v1224_v24 = vld [vmem:[#allocation8 + $0x68] sm:$0xff]  }
  0x53   :  { %v1218_v18 = vld [vmem:[#allocation8 + $0x18] sm:$0xff]   ;;  %v1222_v22 = vld [vmem:[#allocation8 + $0x20] sm:$0xff]   ;;  %v1225_v25 = vld [vmem:[#allocation8 + $0xe8] sm:$0xff]  }
  0x54   :  { %v1219_v19 = vld [vmem:[#allocation8 + $0x98] sm:$0xff]   ;;  %v1223_v23 = vld [vmem:[#allocation8 + $0xa0] sm:$0xff]   ;;  %v1226_v26 = vld [vmem:[#allocation8 + $0x28] sm:$0xff]  }
  0x55   :  { %476 = vmatpush1.bf16.msra.mxu0 %v1154_v30  ;;  %517 = vmatpush1.bf16.msra.mxu1 %v1155_v31  ;;  %v1227_v27 = vld [vmem:[#allocation8 + $0xa8] sm:$0xff]   ;;  %v1228_v28 = vld [vmem:[#allocation8 + $0x70] sm:$0xff]  }
  0x56   :  { %477 = vmatprep.subr.bf16.mxu0 %v1156_v32  ;;  %518 = vmatprep.subr.bf16.mxu1 %v1158_v33  ;;  %v1229_v29 = vld [vmem:[#allocation8 + $0xf0] sm:$0xff]   ;;  %v1232_v32 = vld [vmem:[#allocation8 + $0x78] sm:$0xff]  }
  0x57   :  { %v1230_v30 = vld [vmem:[#allocation8 + $0x30] sm:$0xff]   ;;  %v1233_v33 = vld [vmem:[#allocation8 + $0xf8] sm:$0xff]  }
  0x58   :  { %v1231_v31 = vld [vmem:[#allocation8 + $0xb0] sm:$0xff]  }
  0x59   :  { %478 = vmatpush1.bf16.msra.mxu0 %v1160_v34  ;;  %519 = vmatpush1.bf16.msra.mxu1 %v1161_v35  ;;  %v1234_v34 = vld [vmem:[#allocation8 + $0x38] sm:$0xff]  }
  0x5a   :  { %479 = vmatprep.subr.bf16.mxu0 %v1162_v36  ;;  %520 = vmatprep.subr.bf16.mxu1 %v1164_v37  ;;  %v1235_v35 = vld [vmem:[#allocation8 + $0xb8] sm:$0xff]   ;;  %v560_v36 = vlaneseq }
  0x5c   :  { %v561_v37 = vshrl.u32 %v560_v36, 7 }
  0x5d   :  { %480 = vmatpush1.bf16.msra.mxu0 %v1166_v38  ;;  %521 = vmatpush1.bf16.msra.mxu1 %v1167_v39 }
  0x5e   :  { %481 = vmatprep.subr.bf16.mxu0 %v1168_v40  ;;  %522 = vmatprep.subr.bf16.mxu1 %v1170_v41  ;;  %v562_v38 = vsub.s32 0, %v561_v37  ;;  %v570_v39 = vsub.s32 2, %v561_v37  ;;  %v558_v40 = vld [vmem:[%s1429_s3] sm:$0xf]  ;;  %v566_v41 = vsub.s32 1, %v561_v37 }
  0x61   :  { %482 = vmatpush1.bf16.msra.mxu0 %v1172_v42  ;;  %523 = vmatpush1.bf16.msra.mxu1 %v1173_v43  ;;  %v574_v42 = vsub.s32 3, %v561_v37  ;;  %v563_v43 = vrot.slane %v558_v40, %v562_v38 }
  0x62   :  { %483 = vmatprep.subr.bf16.mxu0 %v1174_v44  ;;  %524 = vmatprep.subr.bf16.mxu1 %v1176_v45  ;;  %v571_v44 = vrot.slane %v558_v40, %v570_v39  ;;  %v567_v45 = vrot.slane %v558_v40, %v566_v41 }
  0x65   :  { %484 = vmatpush1.bf16.msra.mxu0 %v1178_v46  ;;  %525 = vmatpush1.bf16.msra.mxu1 %v1179_v48  ;;  %v575_v46 = vrot.slane %v558_v40, %v574_v42 }
  0x66   :  { %485 = vmatprep.subr.bf16.mxu0 %v1180_v50  ;;  %526 = vmatprep.subr.bf16.mxu1 %v1182_v51 }
  0x69   :  { %486 = vmatpush1.bf16.msra.mxu0 %v1184_v52  ;;  %527 = vmatpush1.bf16.msra.mxu1 %v1185_v53 }
  0x6a   :  { %487 = vmatprep.subr.bf16.mxu0 %v1186_v54  ;;  %528 = vmatprep.subr.bf16.mxu1 %v1188_v55 }
  0x6d   :  { %488 = vmatpush1.bf16.msra.mxu0 %v1190_v56  ;;  %529 = vmatpush1.bf16.msra.mxu1 %v1191_v57 }
  0x6e   :  { %489 = vmatprep.subr.bf16.mxu0 %v1192_v58  ;;  %530 = vmatprep.subr.bf16.mxu1 %v1194_v59 }
  0x71   :  { %490 = vmatpush1.bf16.msra.mxu0 %v1196_v60  ;;  %531 = vmatpush1.bf16.msra.mxu1 %v1197_v61 }
  0x72   :  { %491 = vmatprep.subr.bf16.mxu0 %v1198_v62  ;;  %532 = vmatprep.subr.bf16.mxu1 %v1200_v63 }
  0x75   :  { %492 = vmatpush1.bf16.msra.mxu0 %v1202_v0  ;;  %533 = vmatpush1.bf16.msra.mxu1 %v1203_v1 }
  0x76   :  { %1056 = vmatprep.subr.bf16.mxu0 %v1204_v3  ;;  %1078 = vmatprep.subr.bf16.mxu1 %v1205_v4 }
  0x78   :  { %494 = vmatmul.mubr.bf16.vlgmr.msra.gmra.mrb[0].mxu0 %v75_v6  ;;  %535 = vmatmul.mubr.bf16.vlgmr.msra.gmra.mrb[0].mxu1 %v75_v6 }
  0x79   :  { %1057 = vmatpush3.bf16.msra.mxu0 %v1206_v5  ;;  %1079 = vmatpush3.bf16.msra.mxu1 %v1207_v7  ;;  %v1022_v5 = vld [vmem:[%s1430_s4] ss:$0 sm:$0xff]  ;;  %s1306_s4 = scalar_lea.vmem %s949_s9, 128 }
  0x7a   :  { %1058 = vmatprep.subr.bf16.mxu0 %v1208_v8  ;;  %1080 = vmatprep.subr.bf16.mxu1 %v1209_v9  ;;  %p1307_p10 = scmp.ne.s32.totalorder %s949_s9, %s1306_s4  ;;  %p1312_p12 = scmp.lt.s32.totalorder %s1306_s4, %s1306_s4 }
  0x7c   :  { %p1313_p13 = por %p1312_p12, %p1311_p11 }
  0x7d   :  { %1059 = vmatpush3.bf16.msra.mxu0 %v1210_v10  ;;  %1081 = vmatpush3.bf16.msra.mxu1 %v1211_v11 }
  0x7e   :  { %1060 = vmatprep.subr.bf16.mxu0 %v1212_v12  ;;  %1082 = vmatprep.subr.bf16.mxu1 %v1213_v13  ;;  %p1314_p0 = pnand %p1313_p13, %p1307_p10 }
  0x81   :  { %1061 = vmatpush3.bf16.msra.mxu0 %v1214_v14  ;;  %1083 = vmatpush3.bf16.msra.mxu1 %v1215_v15 }
  0x82   :  { %1062 = vmatprep.subr.bf16.mxu0 %v1216_v16  ;;  %1084 = vmatprep.subr.bf16.mxu1 %v1217_v17 }
  0x85   :  { %1063 = vmatpush3.bf16.msra.mxu0 %v1218_v18  ;;  %1085 = vmatpush3.bf16.msra.mxu1 %v1219_v19 }
  0x86   :  { %1064 = vmatprep.subr.bf16.mxu0 %v1220_v20  ;;  %1086 = vmatprep.subr.bf16.mxu1 %v1221_v21 }
  0x89   :  { %1065 = vmatpush3.bf16.msra.mxu0 %v1222_v22  ;;  %1087 = vmatpush3.bf16.msra.mxu1 %v1223_v23 }
  0x8a   :  { %1066 = vmatprep.subr.bf16.mxu0 %v1224_v24  ;;  %1088 = vmatprep.subr.bf16.mxu1 %v1225_v25 }
  0x8d   :  { %1067 = vmatpush3.bf16.msra.mxu0 %v1226_v26  ;;  %1089 = vmatpush3.bf16.msra.mxu1 %v1227_v27 }
  0x8e   :  { %1068 = vmatprep.subr.bf16.mxu0 %v1228_v28  ;;  %1090 = vmatprep.subr.bf16.mxu1 %v1229_v29 }
  0x91   :  { %1069 = vmatpush3.bf16.msra.mxu0 %v1230_v30  ;;  %1091 = vmatpush3.bf16.msra.mxu1 %v1231_v31 }
  0x92   :  { %1070 = vmatprep.subr.bf16.mxu0 %v1232_v32  ;;  %1092 = vmatprep.subr.bf16.mxu1 %v1233_v33 }
  0x95   :  { %1071 = vmatpush3.bf16.msra.mxu0 %v1234_v34  ;;  %1093 = vmatpush3.bf16.msra.mxu1 %v1235_v35 }
 0x14b   :  { %v495_v47 = vpop.f32.mrb[0].mxu0  ;;  %v536_v48 = vpop.f32.mrb[0].mxu1 }
 0x14c   :  { %v580_v49 = vadd.f32 %v563_v43, %v495_v47  ;;  %v582_v50 = vadd.f32 %v571_v44, %v536_v48  ;;  %v497_v51 = vpop.f32.mrb[1].mxu0  ;;  %v538_v52 = vpop.f32.mrb[1].mxu1 }
 0x14d   :  { %v581_v53 = vadd.f32 %v567_v45, %v497_v51  ;;  %v583_v54 = vadd.f32 %v575_v46, %v538_v52  ;;  %v499_v55 = vpop.f32.mrb[2].mxu0  ;;  %v540_v56 = vpop.f32.mrb[2].mxu1 }
 0x14e   :  { %v584_v57 = vmax.f32 %v580_v49, 0.0  ;;  %v586_v58 = vmax.f32 %v582_v50, 0.0  ;;  %v500_v59 = vpop.f32.mrb[3].mxu0  ;;  %v541_v60 = vpop.f32.mrb[3].mxu1 }
 0x14f   :  { %v585_v61 = vmax.f32 %v581_v53, 0.0  ;;  %v587_v62 = vmax.f32 %v583_v54, 0.0 }
 0x150   :  { %v590_v63 = vpack.c.bf16 %v586_v58, %v586_v58  ;;  %v588_v2 = vpack.c.bf16 %v584_v57, %v584_v57 }
 0x151   :  { %v589_v0 = vpack.c.bf16 %v585_v61, %v585_v61  ;;  %v591_v1 = vpack.c.bf16 %v587_v62, %v587_v62 }
 0x153   :  { %887 = vmatprep.mubr.bf16.mxu0 %v589_v0  ;;  %927 = vmatprep.mubr.bf16.mxu1 %v591_v1 }
 0x154   :  { %888 = vmatmul.mubr.bf16.vlgmr.msra.gmra.mrb[4].mxu0 %v588_v2  ;;  %928 = vmatmul.mubr.bf16.vlgmr.msra.gmra.mrb[4].mxu1 %v590_v63 }
 0x227   :  { %v1072_v3 = vpop.f32.mrb[4].mxu0  ;;  %v1094_v4 = vpop.f32.mrb[4].mxu1 }
 0x228   :  { %v1073_v6 = vpop.f32.mrb[5].mxu0  ;;  %v1095_v7 = vpop.f32.mrb[5].mxu1 }
 0x229   :  { %v1074_v8 = vadd.f32 %v1073_v6, %v1072_v3  ;;  %v1096_v9 = vadd.f32 %v1095_v7, %v1094_v4  ;;  %v1075_v10 = vpop.f32.mrb[6].mxu0  ;;  %v1097_v11 = vpop.f32.mrb[6].mxu1 }
 0x22a   :  { %v1076_v12 = vpop.f32.mrb[7].mxu0  ;;  %v1098_v13 = vpop.f32.mrb[7].mxu1 }
 0x22b   :  { %v890_v14 = vadd.f32 %v1074_v8, %v1022_v5 }
 0x22d   :  { %v930_v15 = vadd.f32 %v1096_v9, %v890_v14 }
 0x22f   :  { %v1055_v16 = vmul.f32 -1.442695, %v930_v15 }
 0x231   :  { %1236 = vpow2.f32 %v1055_v16 }
 0x23b   :  { %v1237_v17 = vpop.eup %1236 }
 0x23c   :  { %v938_v18 = vadd.f32 1.0, %v1237_v17 }
 0x23e   :  { %1238 = vrcp.f32 %v938_v18 }
 0x248   :  { %v1239_v19 = vpop.eup %1238 }
 0x249   :  { %941 = vst [vmem:[#allocation9] sm:$0xff] %v1239_v19 }
 0x24a   :  { %1317 = shalt.err (!%p1314_p0)
}
 0x24b   :  { %s1318_s12 = scalar_lea.hbm %s1431_s5, 128 }
 0x24c   :  { %p1319_p1 = scmp.ne.s32.totalorder %s1431_s5, %s1318_s12  ;;  %p1322_p2 = scmp.lt.u32.totalorder %s1318_s12, %s1431_s5 }
 0x24e   :  { %p1324_p3 = pnand %p1322_p2, %p1319_p1 }
 0x250   :  { %1327 = shalt.err (!%p1324_p3)
}
 0x251   :  { %951 = dma.vmem_to_hbm [thread:$0]  %s949_s9, 128, %s1431_s5, [#allocation5]  }
 0x252   :  { %1332 = dma.done.wait [#allocation5], 128  }
 0x253   :  { %1333 = vsyncadd [#allocation5], 4294967168 }
 0x254   :  { %955 = vsyncpa [#allocation4], 1 }
 0x255   :  { %956 = vsyncpa [#allocation7], 1 }
 0x256   :  { %957 = vsyncpa [#allocation5], 1 }

</bundles_post_ra>
